<compile_context>
chip_gen: v7x
topology: tpu7x:2x2x1
jax: 0.10.0
libtpu: 0.0.40
codegen_flags: <defaults>
</compile_context>

<pallas_src>
import jax
import jax.numpy as jnp
from jax.experimental import pallas as pl
from jax.experimental.pallas import tpu as pltpu

# ---- model hyperparameters (small, consistent with the module) --------------
INPUT_SIZE = 16
HIDDEN_SIZE = 20          # forced by the hardcoded h0 feature dim (20)
NUM_LAYERS = 2            # fused block-diagonal recurrence below is specialized to 2
OUTPUT_SIZE = 8
SEQ_LEN = 11              # forced by fc in_features = 11 * hidden_size
BATCH = 2


# ---- Pallas kernel -----------------------------------------------------------
def _sibi_rnn_kernel(x_ref,       # (T*B, I)   time-major flattened input
                     wih0w_ref,   # (I, 2H)    layer-0 input proj, zero cols for layer-1 half
                     wfused_ref,  # (2H, 2H)   [[Whh0^T, Wih1^T], [0, Whh1^T]]
                     bfused_ref,  # (1, 2H)    [b_ih0+b_hh0 | b_ih1+b_hh1]
                     wfc_ref,     # (T*H, O)   fc weight transposed
                     bfc_ref,     # (1, O)
                     out_ref):    # (B, O)     softmax probabilities
    B, H, T = BATCH, HIDDEN_SIZE, SEQ_LEN
    f32 = jnp.float32

    # Hoisted invariant loads (no per-step VMEM reads / re-broadcasts).
    w_fused = wfused_ref[...]
    b_fused = bfused_ref[...]

    # One-shot layer-0 input projection for all timesteps, biases folded in:
    #   drive[t*B:(t+1)*B, :H] = x[t] @ Wih0^T + b0
    #   drive[t*B:(t+1)*B, H:] = b1                      (zero columns in wih0w)
    drive = jnp.dot(x_ref[...], wih0w_ref[...],
                    preferred_element_type=f32) + b_fused            # (T*B, 2H)

    # Wavefront warm-up (t = 0): no recurrent term yet; layer-1 state stays 0.
    h0_0 = jnp.tanh(drive[0:B, 0:H])                                  # h0[0]
    state = jnp.concatenate([h0_0, jnp.zeros((B, H), f32)], axis=-1)  # [h0[0] | 0]

    # Fused wavefront steps: [h0[t-1] | h1[t-2]] -> [h0[t] | h1[t-1]]
    # (one (B,2H)@(2H,2H) MXU op per step instead of three tiny dependent dots).
    h1_seq = []
    for t in range(1, T):
        pre = jnp.dot(state, w_fused, preferred_element_type=f32) \
              + drive[t * B:(t + 1) * B, :]
        state = jnp.tanh(pre)
        h1_seq.append(state[:, H:])                                   # h1[t-1]

    # Cool-down: produce h1[T-1] from [h0[T-1] | h1[T-2]]; first half is discarded.
    pre = jnp.dot(state, w_fused, preferred_element_type=f32) + b_fused
    h1_seq.append(jnp.tanh(pre)[:, H:])                               # h1[T-1]

    # Flatten(B, T*H) @ W_fc^T as a single matmul.
    seq = jnp.concatenate(h1_seq, axis=-1)                            # (B, T*H)
    logits = jnp.dot(seq, wfc_ref[...],
                     preferred_element_type=f32) + bfc_ref[...]       # (B, O)

    # Numerically-stable softmax.  Exact division: output is (B, O) = (2, 8), so the
    # exact reciprocal is free, and probabilities sum to 1 to f32 precision
    # (the approximate EUP reciprocal previously broke the sum-to-one property).
    m = jnp.max(logits, axis=-1, keepdims=True)
    e = jnp.exp(logits - m)
    denom = jnp.sum(e, axis=-1, keepdims=True)
    out_ref[...] = e / denom


@jax.jit
def sibi_rnn_forward(x, wih0w, wfused, bfused, wfc, bfc):
    """x: (B, T, I) batch-first float32 (like the PyTorch module). Returns (B, O)."""
    # Time-major flatten so each timestep's B rows are contiguous; under jit this
    # fuses into the launch and the kernel only needs cheap static slices.
    x_flat = jnp.transpose(x, (1, 0, 2)).reshape(SEQ_LEN * BATCH, INPUT_SIZE)
    x_flat = x_flat.astype(jnp.float32)
    return pl.pallas_call(
        _sibi_rnn_kernel,
        out_shape=jax.ShapeDtypeStruct((BATCH, OUTPUT_SIZE), jnp.float32),
        in_specs=[pl.BlockSpec(memory_space=pltpu.MemorySpace.VMEM)] * 6,
        out_specs=pl.BlockSpec(memory_space=pltpu.MemorySpace.VMEM),
        # TODO(synk): if ever run at large batch, add a batch grid axis with
        # dimension_semantics=("parallel",) to shard across TensorCores.
    )(x_flat, wih0w, wfused, bfused, wfc, bfc)


# ---- deterministic parameter construction (PyTorch shapes) -------------------
def init_params(key):
    k = 1.0 / jnp.sqrt(jnp.float32(HIDDEN_SIZE))
    keys = jax.random.split(key, 4 * NUM_LAYERS + 2)
    ki = iter(keys)

    w_ih, w_hh, b_ih, b_hh = [], [], [], []
    for l in range(NUM_LAYERS):
        in_dim = INPUT_SIZE if l == 0 else HIDDEN_SIZE
        w_ih.append(jax.random.uniform(next(ki), (HIDDEN_SIZE, in_dim),
                                       jnp.float32, -k, k))
        w_hh.append(jax.random.uniform(next(ki), (HIDDEN_SIZE, HIDDEN_SIZE),
                                       jnp.float32, -k, k))
        b_ih.append(jax.random.uniform(next(ki), (HIDDEN_SIZE,),
                                       jnp.float32, -k, k))
        b_hh.append(jax.random.uniform(next(ki), (HIDDEN_SIZE,),
                                       jnp.float32, -k, k))

    fc_w = jax.random.uniform(next(ki), (OUTPUT_SIZE, SEQ_LEN * HIDDEN_SIZE),
                              jnp.float32, -k, k)
    fc_b = jax.random.uniform(next(ki), (OUTPUT_SIZE,), jnp.float32, -k, k)

    raw = dict(w_ih=w_ih, w_hh=w_hh, b_ih=b_ih, b_hh=b_hh, fc_w=fc_w, fc_b=fc_b)

    # ---- kernel-layout packing (specialized to NUM_LAYERS == 2) -------------
    assert NUM_LAYERS == 2
    H, H2 = HIDDEN_SIZE, 2 * HIDDEN_SIZE
    # widened layer-0 input projection: (I, 2H), zero columns for the layer-1 half
    wih0w = jnp.zeros((INPUT_SIZE, H2), jnp.float32).at[:, :H].set(w_ih[0].T)
    # fused block recurrent matrix: [h0_prev | h1_prev] @ W_fused ->
    #   [:, :H] = h0_prev @ Whh0^T
    #   [:, H:] = h0_prev @ Wih1^T + h1_prev @ Whh1^T
    wfused = jnp.zeros((H2, H2), jnp.float32)
    wfused = wfused.at[:H, :H].set(w_hh[0].T)
    wfused = wfused.at[:H, H:].set(w_ih[1].T)
    wfused = wfused.at[H:, H:].set(w_hh[1].T)
    bfused = jnp.concatenate([b_ih[0] + b_hh[0], b_ih[1] + b_hh[1]])[None, :]  # (1, 2H)
    wfc = fc_w.T                                                   # (T*H, O)
    bfc = fc_b[None, :]                                            # (1, O)
    packed = (wih0w, wfused, bfused, wfc, bfc)
    return raw, packed


# ---- pure-JAX reference (mirrors the PyTorch forward) ------------------------
def ref_forward(x, raw):
    layer_in = x
    for l in range(NUM_LAYERS):
        h = jnp.zeros((x.shape[0], HIDDEN_SIZE), jnp.float32)
        outs = []
        for t in range(SEQ_LEN):
            xt = layer_in[:, t, :]
            h = jnp.tanh(xt @ raw["w_ih"][l].T + raw["b_ih"][l]
                         + h @ raw["w_hh"][l].T + raw["b_hh"][l])
            outs.append(h)
        layer_in = jnp.stack(outs, axis=1)                         # (B, T, H)
    flat = layer_in.reshape(x.shape[0], -1)                        # (B, T*H)
    logits = flat @ raw["fc_w"].T + raw["fc_b"]
    return jax.nn.softmax(logits, axis=-1)


if __name__ == "__main__":
    key = jax.random.PRNGKey(0)
    kx, kp = jax.random.split(key)
    x = jax.random.normal(kx, (BATCH, SEQ_LEN, INPUT_SIZE), jnp.float32)

    raw, packed = init_params(kp)

    pred = sibi_rnn_forward(x, *packed)
    pred = jax.block_until_ready(pred)

    ref = ref_forward(x, raw)
    assert pred.shape == (BATCH, OUTPUT_SIZE)
    assert jnp.allclose(pred, ref, atol=1e-4, rtol=1e-4), (pred, ref)
    assert jnp.allclose(jnp.sum(pred, axis=-1), 1.0, atol=1e-4)

    print("KERNEL_OK")
</pallas_src>

<mosaic_0001>
module attributes {stable_mosaic.version = 11 : i64} {
  func.func @_sibi_rnn_kernel(%arg0: memref<22x16xf32, #tpu.memory_space<vmem>>, %arg1: memref<16x40xf32, #tpu.memory_space<vmem>>, %arg2: memref<40x40xf32, #tpu.memory_space<vmem>>, %arg3: memref<1x40xf32, #tpu.memory_space<vmem>>, %arg4: memref<220x8xf32, #tpu.memory_space<vmem>>, %arg5: memref<1x8xf32, #tpu.memory_space<vmem>>, %arg6: memref<2x8xf32, #tpu.memory_space<vmem>>) attributes {dimension_semantics = [], scalar_prefetch = 0 : i64, scratch_operands = 0 : i64, tpu.core_type = #tpu.core_type<tc>} {
    %c0 = arith.constant 0 : index
    %c0_0 = arith.constant 0 : index
    %0 = vector.load %arg2[%c0, %c0_0] : memref<40x40xf32, #tpu.memory_space<vmem>>, vector<40x40xf32>
    %c0_1 = arith.constant 0 : index
    %c0_2 = arith.constant 0 : index
    %1 = vector.load %arg3[%c0_1, %c0_2] : memref<1x40xf32, #tpu.memory_space<vmem>>, vector<1x40xf32>
    %c0_3 = arith.constant 0 : index
    %c0_4 = arith.constant 0 : index
    %2 = vector.load %arg0[%c0_3, %c0_4] : memref<22x16xf32, #tpu.memory_space<vmem>>, vector<22x16xf32>
    %c0_5 = arith.constant 0 : index
    %c0_6 = arith.constant 0 : index
    %3 = vector.load %arg1[%c0_5, %c0_6] : memref<16x40xf32, #tpu.memory_space<vmem>>, vector<16x40xf32>
    %cst = arith.constant dense<0.000000e+00> : vector<22x40xf32>
    %4 = tpu.matmul %2, %3, %cst {dimension_numbers = #tpu.dot_dimension_numbers<[1], [0], [0], [1], [0, 0, 1, 1], [], []>} : vector<22x16xf32>, vector<16x40xf32>, vector<22x40xf32> -> vector<22x40xf32>
    %5 = vector.broadcast %1 : vector<1x40xf32> to vector<22x40xf32>
    %6 = arith.addf %4, %5 : vector<22x40xf32>
    %7 = vector.extract_strided_slice %6 {offsets = [0, 0], sizes = [2, 20], strides = [1, 1]} : vector<22x40xf32> to vector<2x20xf32>
    %8 = math.tanh %7 : vector<2x20xf32>
    %cst_7 = arith.constant 0.000000e+00 : f32
    %9 = vector.broadcast %cst_7 : f32 to vector<2x20xf32>
    %10 = tpu.concatenate %8, %9 in 1 : vector<2x20xf32>, vector<2x20xf32> -> vector<2x40xf32>
    %cst_8 = arith.constant dense<0.000000e+00> : vector<2x40xf32>
    %11 = tpu.matmul %10, %0, %cst_8 {dimension_numbers = #tpu.dot_dimension_numbers<[1], [0], [0], [1], [0, 0, 1, 1], [], []>} : vector<2x40xf32>, vector<40x40xf32>, vector<2x40xf32> -> vector<2x40xf32>
    %12 = vector.extract_strided_slice %6 {offsets = [2, 0], sizes = [2, 40], strides = [1, 1]} : vector<22x40xf32> to vector<2x40xf32>
    %13 = arith.addf %11, %12 : vector<2x40xf32>
    %14 = math.tanh %13 : vector<2x40xf32>
    %15 = vector.extract_strided_slice %14 {offsets = [0, 20], sizes = [2, 20], strides = [1, 1]} : vector<2x40xf32> to vector<2x20xf32>
    %cst_9 = arith.constant dense<0.000000e+00> : vector<2x40xf32>
    %16 = tpu.matmul %14, %0, %cst_9 {dimension_numbers = #tpu.dot_dimension_numbers<[1], [0], [0], [1], [0, 0, 1, 1], [], []>} : vector<2x40xf32>, vector<40x40xf32>, vector<2x40xf32> -> vector<2x40xf32>
    %17 = vector.extract_strided_slice %6 {offsets = [4, 0], sizes = [2, 40], strides = [1, 1]} : vector<22x40xf32> to vector<2x40xf32>
    %18 = arith.addf %16, %17 : vector<2x40xf32>
    %19 = math.tanh %18 : vector<2x40xf32>
    %20 = vector.extract_strided_slice %19 {offsets = [0, 20], sizes = [2, 20], strides = [1, 1]} : vector<2x40xf32> to vector<2x20xf32>
    %cst_10 = arith.constant dense<0.000000e+00> : vector<2x40xf32>
    %21 = tpu.matmul %19, %0, %cst_10 {dimension_numbers = #tpu.dot_dimension_numbers<[1], [0], [0], [1], [0, 0, 1, 1], [], []>} : vector<2x40xf32>, vector<40x40xf32>, vector<2x40xf32> -> vector<2x40xf32>
    %22 = vector.extract_strided_slice %6 {offsets = [6, 0], sizes = [2, 40], strides = [1, 1]} : vector<22x40xf32> to vector<2x40xf32>
    %23 = arith.addf %21, %22 : vector<2x40xf32>
    %24 = math.tanh %23 : vector<2x40xf32>
    %25 = vector.extract_strided_slice %24 {offsets = [0, 20], sizes = [2, 20], strides = [1, 1]} : vector<2x40xf32> to vector<2x20xf32>
    %cst_11 = arith.constant dense<0.000000e+00> : vector<2x40xf32>
    %26 = tpu.matmul %24, %0, %cst_11 {dimension_numbers = #tpu.dot_dimension_numbers<[1], [0], [0], [1], [0, 0, 1, 1], [], []>} : vector<2x40xf32>, vector<40x40xf32>, vector<2x40xf32> -> vector<2x40xf32>
    %27 = vector.extract_strided_slice %6 {offsets = [8, 0], sizes = [2, 40], strides = [1, 1]} : vector<22x40xf32> to vector<2x40xf32>
    %28 = arith.addf %26, %27 : vector<2x40xf32>
    %29 = math.tanh %28 : vector<2x40xf32>
    %30 = vector.extract_strided_slice %29 {offsets = [0, 20], sizes = [2, 20], strides = [1, 1]} : vector<2x40xf32> to vector<2x20xf32>
    %cst_12 = arith.constant dense<0.000000e+00> : vector<2x40xf32>
    %31 = tpu.matmul %29, %0, %cst_12 {dimension_numbers = #tpu.dot_dimension_numbers<[1], [0], [0], [1], [0, 0, 1, 1], [], []>} : vector<2x40xf32>, vector<40x40xf32>, vector<2x40xf32> -> vector<2x40xf32>
    %32 = vector.extract_strided_slice %6 {offsets = [10, 0], sizes = [2, 40], strides = [1, 1]} : vector<22x40xf32> to vector<2x40xf32>
    %33 = arith.addf %31, %32 : vector<2x40xf32>
    %34 = math.tanh %33 : vector<2x40xf32>
    %35 = vector.extract_strided_slice %34 {offsets = [0, 20], sizes = [2, 20], strides = [1, 1]} : vector<2x40xf32> to vector<2x20xf32>
    %cst_13 = arith.constant dense<0.000000e+00> : vector<2x40xf32>
    %36 = tpu.matmul %34, %0, %cst_13 {dimension_numbers = #tpu.dot_dimension_numbers<[1], [0], [0], [1], [0, 0, 1, 1], [], []>} : vector<2x40xf32>, vector<40x40xf32>, vector<2x40xf32> -> vector<2x40xf32>
    %37 = vector.extract_strided_slice %6 {offsets = [12, 0], sizes = [2, 40], strides = [1, 1]} : vector<22x40xf32> to vector<2x40xf32>
    %38 = arith.addf %36, %37 : vector<2x40xf32>
    %39 = math.tanh %38 : vector<2x40xf32>
    %40 = vector.extract_strided_slice %39 {offsets = [0, 20], sizes = [2, 20], strides = [1, 1]} : vector<2x40xf32> to vector<2x20xf32>
    %cst_14 = arith.constant dense<0.000000e+00> : vector<2x40xf32>
    %41 = tpu.matmul %39, %0, %cst_14 {dimension_numbers = #tpu.dot_dimension_numbers<[1], [0], [0], [1], [0, 0, 1, 1], [], []>} : vector<2x40xf32>, vector<40x40xf32>, vector<2x40xf32> -> vector<2x40xf32>
    %42 = vector.extract_strided_slice %6 {offsets = [14, 0], sizes = [2, 40], strides = [1, 1]} : vector<22x40xf32> to vector<2x40xf32>
    %43 = arith.addf %41, %42 : vector<2x40xf32>
    %44 = math.tanh %43 : vector<2x40xf32>
    %45 = vector.extract_strided_slice %44 {offsets = [0, 20], sizes = [2, 20], strides = [1, 1]} : vector<2x40xf32> to vector<2x20xf32>
    %cst_15 = arith.constant dense<0.000000e+00> : vector<2x40xf32>
    %46 = tpu.matmul %44, %0, %cst_15 {dimension_numbers = #tpu.dot_dimension_numbers<[1], [0], [0], [1], [0, 0, 1, 1], [], []>} : vector<2x40xf32>, vector<40x40xf32>, vector<2x40xf32> -> vector<2x40xf32>
    %47 = vector.extract_strided_slice %6 {offsets = [16, 0], sizes = [2, 40], strides = [1, 1]} : vector<22x40xf32> to vector<2x40xf32>
    %48 = arith.addf %46, %47 : vector<2x40xf32>
    %49 = math.tanh %48 : vector<2x40xf32>
    %50 = vector.extract_strided_slice %49 {offsets = [0, 20], sizes = [2, 20], strides = [1, 1]} : vector<2x40xf32> to vector<2x20xf32>
    %cst_16 = arith.constant dense<0.000000e+00> : vector<2x40xf32>
    %51 = tpu.matmul %49, %0, %cst_16 {dimension_numbers = #tpu.dot_dimension_numbers<[1], [0], [0], [1], [0, 0, 1, 1], [], []>} : vector<2x40xf32>, vector<40x40xf32>, vector<2x40xf32> -> vector<2x40xf32>
    %52 = vector.extract_strided_slice %6 {offsets = [18, 0], sizes = [2, 40], strides = [1, 1]} : vector<22x40xf32> to vector<2x40xf32>
    %53 = arith.addf %51, %52 : vector<2x40xf32>
    %54 = math.tanh %53 : vector<2x40xf32>
    %55 = vector.extract_strided_slice %54 {offsets = [0, 20], sizes = [2, 20], strides = [1, 1]} : vector<2x40xf32> to vector<2x20xf32>
    %cst_17 = arith.constant dense<0.000000e+00> : vector<2x40xf32>
    %56 = tpu.matmul %54, %0, %cst_17 {dimension_numbers = #tpu.dot_dimension_numbers<[1], [0], [0], [1], [0, 0, 1, 1], [], []>} : vector<2x40xf32>, vector<40x40xf32>, vector<2x40xf32> -> vector<2x40xf32>
    %57 = vector.extract_strided_slice %6 {offsets = [20, 0], sizes = [2, 40], strides = [1, 1]} : vector<22x40xf32> to vector<2x40xf32>
    %58 = arith.addf %56, %57 : vector<2x40xf32>
    %59 = math.tanh %58 : vector<2x40xf32>
    %60 = vector.extract_strided_slice %59 {offsets = [0, 20], sizes = [2, 20], strides = [1, 1]} : vector<2x40xf32> to vector<2x20xf32>
    %cst_18 = arith.constant dense<0.000000e+00> : vector<2x40xf32>
    %61 = tpu.matmul %59, %0, %cst_18 {dimension_numbers = #tpu.dot_dimension_numbers<[1], [0], [0], [1], [0, 0, 1, 1], [], []>} : vector<2x40xf32>, vector<40x40xf32>, vector<2x40xf32> -> vector<2x40xf32>
    %62 = vector.broadcast %1 : vector<1x40xf32> to vector<2x40xf32>
    %63 = arith.addf %61, %62 : vector<2x40xf32>
    %64 = math.tanh %63 : vector<2x40xf32>
    %65 = vector.extract_strided_slice %64 {offsets = [0, 20], sizes = [2, 20], strides = [1, 1]} : vector<2x40xf32> to vector<2x20xf32>
    %66 = tpu.concatenate %15, %20, %25, %30, %35, %40, %45, %50, %55, %60, %65 in 1 : vector<2x20xf32>, vector<2x20xf32>, vector<2x20xf32>, vector<2x20xf32>, vector<2x20xf32>, vector<2x20xf32>, vector<2x20xf32>, vector<2x20xf32>, vector<2x20xf32>, vector<2x20xf32>, vector<2x20xf32> -> vector<2x220xf32>
    %c0_19 = arith.constant 0 : index
    %c0_20 = arith.constant 0 : index
    %67 = vector.load %arg4[%c0_19, %c0_20] : memref<220x8xf32, #tpu.memory_space<vmem>>, vector<220x8xf32>
    %cst_21 = arith.constant dense<0.000000e+00> : vector<2x8xf32>
    %68 = tpu.matmul %66, %67, %cst_21 {dimension_numbers = #tpu.dot_dimension_numbers<[1], [0], [0], [1], [0, 0, 1, 1], [], []>} : vector<2x220xf32>, vector<220x8xf32>, vector<2x8xf32> -> vector<2x8xf32>
    %c0_22 = arith.constant 0 : index
    %c0_23 = arith.constant 0 : index
    %69 = vector.load %arg5[%c0_22, %c0_23] : memref<1x8xf32, #tpu.memory_space<vmem>>, vector<1x8xf32>
    %70 = vector.broadcast %69 : vector<1x8xf32> to vector<2x8xf32>
    %71 = arith.addf %68, %70 : vector<2x8xf32>
    %cst_24 = arith.constant dense<0xFF800000> : vector<2xf32>
    %72 = vector.multi_reduction <maximumf>, %71, %cst_24 [1] : vector<2x8xf32> to vector<2xf32>
    %73 = vector.shape_cast %72 : vector<2xf32> to vector<2x1xf32>
    %74 = vector.broadcast %73 : vector<2x1xf32> to vector<2x8xf32>
    %75 = arith.subf %71, %74 : vector<2x8xf32>
    %76 = math.exp %75 : vector<2x8xf32>
    %cst_25 = arith.constant dense<0.000000e+00> : vector<2xf32>
    %77 = vector.multi_reduction <add>, %76, %cst_25 [1] : vector<2x8xf32> to vector<2xf32>
    %78 = vector.shape_cast %77 : vector<2xf32> to vector<2x1xf32>
    %79 = vector.broadcast %78 : vector<2x1xf32> to vector<2x8xf32>
    %80 = arith.divf %76, %79 : vector<2x8xf32>
    %c0_26 = arith.constant 0 : index
    %c0_27 = arith.constant 0 : index
    %81 = vector.load %arg6[%c0_26, %c0_27] : memref<2x8xf32, #tpu.memory_space<vmem>>, vector<2x8xf32>
    tpu.vector_store %arg6[%c0_26, %c0_27], %80 {strides = array<i32>} : memref<2x8xf32, #tpu.memory_space<vmem>>, vector<2x8xf32>,
    return
  }
}

</mosaic_0001>

<bundles_post_ra>
// kernel: sibi_rnn_forward.1
= control target key start
LH: loop header
LB: loop body
LE: loop exit
PB: predicated region body
PF: predicated region fallthrough
CT: control target
= control target key end

     0   :  { %v1581_v2 = vmov 0.0|0.0   ;;  %vm1582_vm0 = vmmov 0   ;;  %v1583_v4 = vmov 0.0   ;;  %s1911_s0 = inlined_call_operand.vmem [shape: f32[22,16], index: 0, kind: input, shape index: {}]   ;;  %s1912_s1 = inlined_call_operand.vmem [shape: f32[16,40], index: 1, kind: input, shape index: {}]   ;;  %s1913_s2 = inlined_call_operand.vmem [shape: f32[40,40], index: 2, kind: input, shape index: {}]   ;;  %s1914_s3 = inlined_call_operand.vmem [shape: f32[1,40], index: 3, kind: input, shape index: {}]   ;;  %s1915_s4 = inlined_call_operand.vmem [shape: f32[220,8], index: 4, kind: input, shape index: {}]   ;;  %s1916_s5 = inlined_call_operand.vmem [shape: f32[1,8], index: 5, kind: input, shape index: {}]   ;;  %s1917_s6 = inlined_call_operand.hbm [shape: f32[2,8], index: 6, kind: output, shape index: {}]  }
   0x1   :  { %v33_v0 = vld [vmem:[%s1912_s1] sm:$0xff]  ;;  %v34_v1 = vld [vmem:[%s1912_s1 + $0x8] sm:$0xff]  ;;  %1402 = vmatprep.subr.bf16.mxu1 %v1581_v2  ;;  %1250 = vmatprep.mubr.msk.f32.mxu1 %vm1582_vm0, %v1583_v4 }
   0x2   :  { %v1403_v3 = vpack.c.bf16 %v34_v1, %v33_v0 }
   0x3   :  { %11 = vsyncpa [#allocation3], 0  ;;  %1435 = vmatprep.subr.bf16.mxu0 %v1581_v2  ;;  %1334 = vmatprep.mubr.msk.f32.mxu0 %vm1582_vm0, %v1583_v4  ;;  %v30_v5 = vld [vmem:[%s1911_s0] sm:$0xff]  ;;  %vm41_vm1 = vcmask 130048   ;;  %v25_v7 = vld [vmem:[%s1913_s2 + $0x8] sm:$0xff]  ;;  %vm132_vm2 = vcmask 162816  }
   0x4   :  { %1404 = vmatpush3.bf16.msra.mxu1 %v1403_v3  ;;  %v24_v6 = vld [vmem:[%s1913_s2] sm:$0xff]  ;;  %v31_v8 = vld [vmem:[%s1911_s0 + $0x8] sm:$0xff]  ;;  %v26_v10 = vld [vmem:[%s1913_s2 + $0x10] sm:$0xff]  ;;  %vm137_vm3 = vcmask 326656   ;;  %s1586_s17 = smov 40   ;;  %s1587_s18 = smov 60  }
   0x5   :  { %1405 = vmatprep.subr.bf16.mxu1 %v1581_v2  ;;  %v1659_v9 = vpack.c.bf16 %v25_v7, %v24_v6  ;;  %v27_v11 = vld [vmem:[%s1913_s2 + $0x18] sm:$0xff]  ;;  %v32_v12 = vld [vmem:[%s1911_s0 + $0x10] sm:$0x3f]  ;;  %v1688_v14 = vld [vmem:[%s1913_s2 + $0x20] sm:$0xff]  ;;  %s1584_s2 = smov 108   ;;  %s1588_s19 = smov 80  }
   0x6   :  { %v1674_v13 = vpack.c.bf16 %v27_v11, %v26_v10  ;;  %v1698_v15 = vld [vmem:[%s1914_s3] ss:$0 sm:$0xff]  ;;  %s1585_s3 = smov 20   ;;  %s1589_s20 = smov 100   ;;  %vm1056_vm4 = vcmask 1043456   ;;  %vm1593_vm5 = vmmov 1  }
   0x7   :  { %1251 = vmatmul.mubr.msk.f32.vlgmr.msra.gmra.mrb[0].mxu1 %vm41_vm1, %v30_v5  ;;  %1437 = vmatpush3.bf16.msra.mxu0 %v1659_v9  ;;  %s1590_s21 = smov 120   ;;  %s1591_s22 = smov 12   ;;  %vm1512_vm6 = vmpackc.low %vm1056_vm4, %vm1593_vm5  ;;  %vm1009_vm7 = vcmask 97280   ;;  %vm1001_vm8 = vcmask 490496   ;;  %vm1011_vm9 = vcmask 261120   ;;  %vm1003_vm10 = vcmask 654336  }
   0x8   :  { %1253 = vmatprep.mubr.msk.f32.mxu1 %vm1582_vm0, %v1583_v4  ;;  %1407 = vmatpush3.bf16.msra.mxu1 %v1659_v9  ;;  %s1592_s23 = smov 32   ;;  %s1594_s24 = smov 52   ;;  %vm1013_vm11 = vcmask 424960   ;;  %vm1005_vm12 = vcmask 818176   ;;  %vm1015_vm13 = vcmask 588800   ;;  %vm1007_vm14 = vcmask 982016  }
   0x9   :  { %1408 = vmatprep.subr.bf16.mxu1 %v1581_v2  ;;  %1438 = vmatprep.subr.bf16.mxu0 %v1581_v2  ;;  %vm1052_vm15 = vcmask 752640   ;;  %s1595_s26 = smov [#allocation2]  }
   0xa   :  { %s1149_s1 = sshll.u32 %s1595_s26, 4  ;;  %s1150_s1 = int_to_ptr.vmem [resolvable:$true] %s1149_s1 }
   0xb   :  { %1254 = vmatmul.mubr.msk.f32.gmra.mrb[2].mxu1 %vm41_vm1, %v31_v8  ;;  %1440 = vmatpush3.bf16.msra.mxu0 %v1674_v13  ;;  %p1562_p1 = scmp.lt.s32.totalorder %s1150_s1, %s1150_s1 }
   0xc   :  { %1256 = vmatprep.mubr.msk.f32.mxu1 %vm1582_vm0, %v1583_v4  ;;  %1410 = vmatpush3.bf16.msra.mxu1 %v1674_v13 }
   0xd   :  { %1267 = vmatprep.subr.mxu1 %v1583_v4  ;;  %1332 = vmatprep.subr.mxu0 %v1583_v4 }
   0xf   :  { %1257 = vmatmul.mubr.msk.f32.gmra.mrb[4].mxu1 %vm41_vm1, %v32_v12  ;;  %1333 = vmatpush3.msra.mxu0 %v1688_v14 }
  0x10   :  { %1269 = vmatprep.mubr.msk.f32.mxu1 %vm1582_vm0, %v1583_v4  ;;  %1268 = vmatpush3.msra.mxu1 %v1688_v14 }
  0x11   :  { %1411 = vmatprep.subr.bf16.mxu1 %v1581_v2  ;;  %1447 = vmatprep.subr.bf16.mxu0 %v1581_v2 }
  0xda   :  { %v117_v16 = vpop.f32.mrb[0].mxu1 }
  0xdb   :  { %v118_v17 = vadd.f32 %v1698_v15, %v117_v16  ;;  %v1252_v18 = vpop.f32.mrb[1].mxu1 }
  0xdd   :  { %1529 = vtanh.f32 %v118_v17  ;;  %v135_v25 = vrot.slane %v118_v17, 2  ;;  %v212_v30 = vrot.slane %v118_v17, 4  ;;  %v288_v35 = vrot.slane %v118_v17, 6  ;;  %v1020_v17 = vld [vmem:[%s1915_s4 + $0x18] sm:$0xff] }
  0xde   :  { %v122_v21 = vpop.f32.mrb[2].mxu1 }
  0xdf   :  { %v1255_v22 = vpop.f32.mrb[3].mxu1  ;;  %v123_v40 = vadd.f32 %v1698_v15, %v122_v21 }
  0xe0   :  { %v1023_v22 = vld [vmem:[%s1915_s4 + $0x30] sm:$0xff] }
  0xe1   :  { %v439_v45 = vrot.slane %v123_v40, 2  ;;  %v515_v50 = vrot.slane %v123_v40, 4  ;;  %v591_v55 = vrot.slane %v123_v40, 6 }
  0xe2   :  { %v1711_v23 = vpop.f32.mrb[4].mxu1 }
  0xe3   :  { %v1258_v24 = vpop.f32.mrb[5].mxu1  ;;  %v128_v60 = vadd.f32 %v1698_v15, %v1711_v23  ;;  %v1024_v23 = vld [vmem:[%s1915_s4 + $0x38] sm:$0xff] }
  0xe4   :  { %v1481_v24 = vpack.c.bf16 %v1024_v23, %v1023_v22 }
  0xe5   :  { %v742_v1 = vrot.slane %v128_v60, 2  ;;  %v818_v8 = vrot.slane %v128_v60, 4 }
  0xe7   :  { %v1530_v19 = vpop.eup %1529 }
  0xe8   :  { %v133_v20 = vsel %vm132_vm2, %v1530_v19, 0.0  ;;  %v1021_v19 = vld [vmem:[%s1915_s4 + $0x20] sm:$0xff] }
  0xe9   :  { %1270 = vmatmul.mubr.msk.f32.vlgmr.msra.gmra.mrb[6].mxu1 %vm137_vm3, %v133_v20  ;;  %v1022_v20 = vld [vmem:[%s1915_s4 + $0x28] sm:$0xff] }
  0xea   :  { %1413 = vmatpush3.bf16.msra.mxu1 %v1659_v9  ;;  %1282 = vmatprep.mubr.msk.f32.mxu1 %vm1582_vm0, %v1583_v4  ;;  %v1478_v21 = vpack.c.bf16 %v1022_v20, %v1021_v19 }
  0xeb   :  { %1414 = vmatprep.subr.bf16.mxu1 %v1581_v2 }
  0xee   :  { %1416 = vmatpush3.bf16.msra.mxu1 %v1674_v13 }
  0xef   :  { %1280 = vmatprep.subr.mxu1 %v1583_v4 }
  0xf2   :  { %1281 = vmatpush3.msra.mxu1 %v1688_v14 }
  0xf3   :  { %1417 = vmatprep.subr.bf16.mxu1 %v1581_v2 }
 0x1bc   :  { %v207_v26 = vpop.f32.mrb[6].mxu1 }
 0x1bd   :  { %v208_v27 = vadd.f32 %v207_v26, %v135_v25  ;;  %v1271_v28 = vpop.f32.mrb[7].mxu1  ;;  %v1025_v25 = vld [vmem:[%s1915_s4 + $0x40] sm:$0xff]  ;;  %v1026_v26 = vld [vmem:[%s1915_s4 + $0x48] sm:$0xff] }
 0x1be   :  { %v1027_v28 = vld [vmem:[%s1915_s4 + $0x50] sm:$0xff] }
 0x1bf   :  { %1531 = vtanh.f32 %v208_v27  ;;  %v1484_v27 = vpack.c.bf16 %v1026_v26, %v1025_v25 }
 0x1c9   :  { %v1532_v29 = vpop.eup %1531 }
 0x1ca   :  { %968 = vrot.lane.b32.xlu0 %v1532_v29, %s1584_s2  ;;  %1283 = vmatmul.mubr.msk.f32.vlgmr.msra.gmra.mrb[8].mxu1 %vm137_vm3, %v1532_v29  ;;  %v1028_v29 = vld [vmem:[%s1915_s4 + $0x58] sm:$0xff] }
 0x1cb   :  { %1419 = vmatpush3.bf16.msra.mxu1 %v1659_v9  ;;  %1295 = vmatprep.mubr.msk.f32.mxu1 %vm1582_vm0, %v1583_v4 }
 0x1cc   :  { %1420 = vmatprep.subr.bf16.mxu1 %v1581_v2 }
 0x1cf   :  { %1422 = vmatpush3.bf16.msra.mxu1 %v1674_v13 }
 0x1d0   :  { %1293 = vmatprep.subr.mxu1 %v1583_v4 }
 0x1d3   :  { %1294 = vmatpush3.msra.mxu1 %v1688_v14 }
 0x1d4   :  { %1423 = vmatprep.subr.bf16.mxu1 %v1581_v2 }
 0x29d   :  { %v283_v31 = vpop.f32.mrb[8].mxu1 }
 0x29e   :  { %v284_v32 = vadd.f32 %v283_v31, %v212_v30  ;;  %v1284_v33 = vpop.f32.mrb[9].mxu1  ;;  %v1487_v30 = vpack.c.bf16 %v1028_v29, %v1027_v28  ;;  %v1029_v31 = vld [vmem:[%s1915_s4 + $0x60] sm:$0xff] }
 0x2a0   :  { %1533 = vtanh.f32 %v284_v32  ;;  %v1030_v32 = vld [vmem:[%s1915_s4 + $0x68] sm:$0xff] }
 0x2a1   :  { %v1490_v33 = vpack.c.bf16 %v1030_v32, %v1029_v31 }
 0x2aa   :  { %v1722_v34 = vpop.eup %1533 }
 0x2ab   :  { %1296 = vmatmul.mubr.msk.f32.vlgmr.msra.gmra.mrb[10].mxu1 %vm137_vm3, %v1722_v34 }
 0x2ac   :  { %1425 = vmatpush3.bf16.msra.mxu1 %v1659_v9  ;;  %1308 = vmatprep.mubr.msk.f32.mxu1 %vm1582_vm0, %v1583_v4 }
 0x2ad   :  { %1426 = vmatprep.subr.bf16.mxu1 %v1581_v2 }
 0x2b0   :  { %1428 = vmatpush3.bf16.msra.mxu1 %v1674_v13 }
 0x2b1   :  { %1306 = vmatprep.subr.mxu1 %v1583_v4 }
 0x2b4   :  { %1307 = vmatpush3.msra.mxu1 %v1688_v14 }
 0x2b5   :  { %1429 = vmatprep.subr.bf16.mxu1 %v1581_v2 }
 0x37e   :  { %v359_v36 = vpop.f32.mrb[10].mxu1 }
 0x37f   :  { %v360_v37 = vadd.f32 %v359_v36, %v288_v35  ;;  %v1297_v38 = vpop.f32.mrb[11].mxu1  ;;  %v1031_v35 = vld [vmem:[%s1915_s4 + $0x70] sm:$0xff]  ;;  %v1032_v36 = vld [vmem:[%s1915_s4 + $0x78] sm:$0xff] }
 0x380   :  { %v1033_v38 = vld [vmem:[%s1915_s4 + $0x80] sm:$0xff] }
 0x381   :  { %1535 = vtanh.f32 %v360_v37  ;;  %v1493_v37 = vpack.c.bf16 %v1032_v36, %v1031_v35 }
 0x38b   :  { %v1536_v39 = vpop.eup %1535 }
 0x38c   :  { %971 = vrot.lane.b32.xlu0 %v1536_v39, %s1585_s3  ;;  %1309 = vmatmul.mubr.msk.f32.vlgmr.msra.gmra.mrb[12].mxu1 %vm137_vm3, %v1536_v39  ;;  %v1034_v39 = vld [vmem:[%s1915_s4 + $0x88] sm:$0xff] }
 0x38d   :  { %1431 = vmatpush3.bf16.msra.mxu1 %v1659_v9  ;;  %1321 = vmatprep.mubr.msk.f32.mxu1 %vm1582_vm0, %v1583_v4 }
 0x38e   :  { %1432 = vmatprep.subr.bf16.mxu1 %v1581_v2 }
 0x391   :  { %1434 = vmatpush3.bf16.msra.mxu1 %v1674_v13 }
 0x392   :  { %1319 = vmatprep.subr.mxu1 %v1583_v4 }
 0x395   :  { %1320 = vmatpush3.msra.mxu1 %v1688_v14 }
 0x396   :  { %1441 = vmatprep.subr.bf16.mxu1 %v1581_v2 }
 0x45f   :  { %v433_v41 = vpop.f32.mrb[12].mxu1 }
 0x460   :  { %v434_v42 = vadd.f32 %v433_v41, %v123_v40  ;;  %v1310_v43 = vpop.f32.mrb[13].mxu1  ;;  %v1496_v40 = vpack.c.bf16 %v1034_v39, %v1033_v38  ;;  %v1035_v41 = vld [vmem:[%s1915_s4 + $0x90] sm:$0xff] }
 0x462   :  { %1537 = vtanh.f32 %v434_v42  ;;  %v1036_v42 = vld [vmem:[%s1915_s4 + $0x98] sm:$0xff] }
 0x463   :  { %v1499_v43 = vpack.c.bf16 %v1036_v42, %v1035_v41 }
 0x46c   :  { %v1538_v44 = vpop.eup %1537 }
 0x46d   :  { %974 = vrot.lane.b32.xlu0 %v1538_v44, %s1586_s17  ;;  %1322 = vmatmul.mubr.msk.f32.vlgmr.msra.gmra.mrb[14].mxu1 %vm137_vm3, %v1538_v44  ;;  %v1037_v44 = vld [vmem:[%s1915_s4 + $0xa0] sm:$0xff] }
 0x46e   :  { %1443 = vmatpush3.bf16.msra.mxu1 %v1659_v9  ;;  %1347 = vmatprep.mubr.msk.f32.mxu1 %vm1582_vm0, %v1583_v4 }
 0x46f   :  { %1444 = vmatprep.subr.bf16.mxu1 %v1581_v2 }
 0x472   :  { %1446 = vmatpush3.bf16.msra.mxu1 %v1674_v13 }
 0x473   :  { %1345 = vmatprep.subr.mxu1 %v1583_v4 }
 0x476   :  { %1346 = vmatpush3.msra.mxu1 %v1688_v14 }
 0x477   :  { %1453 = vmatprep.subr.bf16.mxu1 %v1581_v2 }
 0x540   :  { %v510_v46 = vpop.f32.mrb[14].mxu1 }
 0x541   :  { %v511_v47 = vadd.f32 %v510_v46, %v439_v45  ;;  %v1323_v48 = vpop.f32.mrb[15].mxu1  ;;  %v1038_v45 = vld [vmem:[%s1915_s4 + $0xa8] sm:$0xff] }
 0x542   :  { %v1502_v46 = vpack.c.bf16 %v1038_v45, %v1037_v44  ;;  %v1040_v48 = vld [vmem:[%s1915_s4 + $0xb8] sm:$0xff] }
 0x543   :  { %1539 = vtanh.f32 %v511_v47  ;;  %v1039_v47 = vld [vmem:[%s1915_s4 + $0xb0] sm:$0xff] }
 0x54d   :  { %v1540_v49 = vpop.eup %1539 }
 0x54e   :  { %977 = vrot.lane.b32.xlu0 %v1540_v49, %s1587_s18  ;;  %1335 = vmatmul.mubr.msk.f32.vlgmr.msra.gmra.mrb[0].mxu0 %vm137_vm3, %v1540_v49  ;;  %v1505_v49 = vpack.c.bf16 %v1040_v48, %v1039_v47 }
 0x54f   :  { %1449 = vmatpush3.bf16.msra.mxu0 %v1659_v9  ;;  %1360 = vmatprep.mubr.msk.f32.mxu0 %vm1582_vm0, %v1583_v4 }
 0x550   :  { %1450 = vmatprep.subr.bf16.mxu0 %v1581_v2 }
 0x553   :  { %1452 = vmatpush3.bf16.msra.mxu0 %v1674_v13 }
 0x554   :  { %1358 = vmatprep.subr.mxu0 %v1583_v4 }
 0x557   :  { %1359 = vmatpush3.msra.mxu0 %v1688_v14 }
 0x558   :  { %1459 = vmatprep.subr.bf16.mxu0 %v1581_v2 }
 0x621   :  { %v586_v51 = vpop.f32.mrb[0].mxu0 }
 0x622   :  { %v587_v52 = vadd.f32 %v586_v51, %v515_v50  ;;  %v1336_v53 = vpop.f32.mrb[1].mxu0  ;;  %v1041_v50 = vld [vmem:[%s1915_s4 + $0xc0] sm:$0xff]  ;;  %v1042_v51 = vld [vmem:[%s1915_s4 + $0xc8] sm:$0xff] }
 0x623   :  { %v1043_v53 = vld [vmem:[%s1915_s4 + $0xd0] sm:$0xff] }
 0x624   :  { %1541 = vtanh.f32 %v587_v52  ;;  %v1508_v52 = vpack.c.bf16 %v1042_v51, %v1041_v50 }
 0x62e   :  { %v1542_v54 = vpop.eup %1541 }
 0x62f   :  { %980 = vrot.lane.b32.xlu0 %v1542_v54, %s1588_s19  ;;  %1348 = vmatmul.mubr.msk.f32.vlgmr.msra.gmra.mrb[16].mxu1 %vm137_vm3, %v1542_v54  ;;  %v1044_v54 = vld [vmem:[%s1915_s4 + $0xd8] sm:$0xf] }
 0x630   :  { %1455 = vmatpush3.bf16.msra.mxu1 %v1659_v9  ;;  %1373 = vmatprep.mubr.msk.f32.mxu1 %vm1582_vm0, %v1583_v4 }
 0x631   :  { %1456 = vmatprep.subr.bf16.mxu1 %v1581_v2 }
 0x634   :  { %1458 = vmatpush3.bf16.msra.mxu1 %v1674_v13 }
 0x635   :  { %1371 = vmatprep.subr.mxu1 %v1583_v4 }
 0x638   :  { %1372 = vmatpush3.msra.mxu1 %v1688_v14 }
 0x639   :  { %1465 = vmatprep.subr.bf16.mxu1 %v1581_v2 }
 0x702   :  { %v662_v56 = vpop.f32.mrb[16].mxu1 }
 0x703   :  { %v663_v57 = vadd.f32 %v662_v56, %v591_v55  ;;  %v1349_v58 = vpop.f32.mrb[17].mxu1  ;;  %v1511_v55 = vpack.c.bf16 %v1044_v54, %v1043_v53 }
 0x705   :  { %1543 = vtanh.f32 %v663_v57 }
 0x70f   :  { %v1544_v59 = vpop.eup %1543 }
 0x710   :  { %983 = vrot.lane.b32.xlu1 %v1544_v59, %s1589_s20  ;;  %1361 = vmatmul.mubr.msk.f32.vlgmr.msra.gmra.mrb[2].mxu0 %vm137_vm3, %v1544_v59 }
 0x711   :  { %1461 = vmatpush3.bf16.msra.mxu0 %v1659_v9  ;;  %1386 = vmatprep.mubr.msk.f32.mxu0 %vm1582_vm0, %v1583_v4 }
 0x712   :  { %1462 = vmatprep.subr.bf16.mxu0 %v1581_v2 }
 0x715   :  { %1464 = vmatpush3.bf16.msra.mxu0 %v1674_v13 }
 0x716   :  { %1384 = vmatprep.subr.mxu0 %v1583_v4 }
 0x719   :  { %1385 = vmatpush3.msra.mxu0 %v1688_v14 }
 0x71a   :  { %1471 = vmatprep.subr.bf16.mxu0 %v1581_v2 }
 0x7e3   :  { %v736_v61 = vpop.f32.mrb[2].mxu0 }
 0x7e4   :  { %v737_v62 = vadd.f32 %v736_v61, %v128_v60  ;;  %v1362_v63 = vpop.f32.mrb[3].mxu0  ;;  %v969_v60 = vpop.permute.xlu0 %968 }
 0x7e5   :  { %v984_v61 = vpop.permute.xlu1 %983 }
 0x7e6   :  { %1545 = vtanh.f32 %v737_v62 }
 0x7e8   :  { %v972_v62 = vpop.permute.xlu0 %971 }
 0x7f0   :  { %v1546_v0 = vpop.eup %1545 }
 0x7f1   :  { %986 = vrot.lane.b32.xlu1 %v1546_v0, %s1590_s21  ;;  %1374 = vmatmul.mubr.msk.f32.vlgmr.msra.gmra.mrb[18].mxu1 %vm137_vm3, %v1546_v0  ;;  %v975_v0 = vpop.permute.xlu0 %974 }
 0x7f2   :  { %1467 = vmatpush3.bf16.msra.mxu1 %v1659_v9  ;;  %1399 = vmatprep.mubr.msk.f32.mxu1 %vm1582_vm0, %v1583_v4  ;;  %vm1130_vm0 = vcmask 58368  }
 0x7f3   :  { %1468 = vmatprep.subr.bf16.mxu1 %v1581_v2 }
 0x7f6   :  { %1470 = vmatpush3.bf16.msra.mxu1 %v1674_v13  ;;  %v1018_v13 = vld [vmem:[%s1915_s4 + $0x8] sm:$0xff] }
 0x7f7   :  { %1397 = vmatprep.subr.mxu1 %v1583_v4  ;;  %v1017_v4 = vld [vmem:[%s1915_s4] sm:$0xff] }
 0x7f8   :  { %v1472_v16 = vpack.c.bf16 %v1018_v13, %v1017_v4 }
 0x7fa   :  { %1398 = vmatpush3.msra.mxu1 %v1688_v14  ;;  %v1019_v14 = vld [vmem:[%s1915_s4 + $0x10] sm:$0xff] }
 0x7fb   :  { %v1475_v18 = vpack.c.bf16 %v1020_v17, %v1019_v14 }
 0x863   :  { %v987_v63 = vpop.permute.xlu1 %986 }
 0x8c4   :  { %v813_v3 = vpop.f32.mrb[18].mxu1 }
 0x8c5   :  { %v814_v5 = vadd.f32 %v813_v3, %v742_v1  ;;  %v1375_v6 = vpop.f32.mrb[19].mxu1  ;;  %v978_v3 = vpop.permute.xlu0 %977 }
 0x8c7   :  { %1547 = vtanh.f32 %v814_v5  ;;  %v999_v5 = vsel %vm132_vm2, %v969_v60, %v1722_v34  ;;  %v1172_v34 = vld [vmem:[%s1916_s5] ss:$0 sm:$0xff]  ;;  %s1557_s5 = scalar_lea.vmem %s1150_s1, 32 }
 0x8c8   :  { %p1558_p0 = scmp.ne.s32.totalorder %s1150_s1, %s1557_s5  ;;  %p1563_p2 = scmp.lt.s32.totalorder %s1557_s5, %s1557_s5 }
 0x8c9   :  { %v981_v6 = vpop.permute.xlu0 %980 }
 0x8ca   :  { %p1564_p3 = por %p1563_p2, %p1562_p1 }
 0x8cc   :  { %p1565_p4 = pnand %p1564_p3, %p1558_p0 }
 0x8d1   :  { %v1548_v7 = vpop.eup %1547 }
 0x8d2   :  { %989 = vrot.lane.b32.xlu1 %v1548_v7, %s1591_s22  ;;  %1387 = vmatmul.mubr.msk.f32.vlgmr.msra.gmra.mrb[4].mxu0 %vm137_vm3, %v1548_v7  ;;  %v1010_v7 = vsel %vm1009_vm7, %v984_v61, %v987_v63 }
 0x8d3   :  { %1473 = vmatpush1.bf16.msra.mxu0 %v1472_v16 }
 0x8d4   :  { %1474 = vmatprep.subr.bf16.mxu0 %v1581_v2 }
 0x8d7   :  { %1476 = vmatpush1.bf16.msra.mxu0 %v1475_v18 }
 0x8d8   :  { %1477 = vmatprep.subr.bf16.mxu0 %v1581_v2 }
 0x8db   :  { %1479 = vmatpush1.bf16.msra.mxu0 %v1478_v21 }
 0x8dc   :  { %1480 = vmatprep.subr.bf16.mxu0 %v1581_v2 }
 0x8df   :  { %1482 = vmatpush1.bf16.msra.mxu0 %v1481_v24 }
 0x8e0   :  { %1483 = vmatprep.subr.bf16.mxu0 %v1581_v2 }
 0x8e3   :  { %1485 = vmatpush1.bf16.msra.mxu0 %v1484_v27 }
 0x8e4   :  { %1486 = vmatprep.subr.bf16.mxu0 %v1581_v2 }
 0x8e7   :  { %1488 = vmatpush1.bf16.msra.mxu0 %v1487_v30 }
 0x8e8   :  { %1489 = vmatprep.subr.bf16.mxu0 %v1581_v2 }
 0x8eb   :  { %1491 = vmatpush1.bf16.msra.mxu0 %v1490_v33 }
 0x8ec   :  { %1492 = vmatprep.subr.bf16.mxu0 %v1581_v2 }
 0x8ef   :  { %1494 = vmatpush1.bf16.msra.mxu0 %v1493_v37 }
 0x8f0   :  { %1495 = vmatprep.subr.bf16.mxu0 %v1581_v2 }
 0x8f3   :  { %1497 = vmatpush1.bf16.msra.mxu0 %v1496_v40 }
 0x8f4   :  { %1498 = vmatprep.subr.bf16.mxu0 %v1581_v2 }
 0x8f7   :  { %1500 = vmatpush1.bf16.msra.mxu0 %v1499_v43 }
 0x8f8   :  { %1501 = vmatprep.subr.bf16.mxu0 %v1581_v2 }
 0x8fb   :  { %1503 = vmatpush1.bf16.msra.mxu0 %v1502_v46 }
 0x8fc   :  { %1504 = vmatprep.subr.bf16.mxu0 %v1581_v2 }
 0x8ff   :  { %1506 = vmatpush1.bf16.msra.mxu0 %v1505_v49 }
 0x900   :  { %1507 = vmatprep.subr.bf16.mxu0 %v1581_v2 }
 0x903   :  { %1509 = vmatpush1.bf16.msra.mxu0 %v1508_v52 }
 0x904   :  { %1510 = vmatprep.subr.bf16.mxu0 %v1581_v2 }
 0x907   :  { %1513 = vmatpush1.bf16.msk.msra.mxu0 %vm1512_vm6, %v1511_v55 }
 0x944   :  { %v990_v1 = vpop.permute.xlu1 %989 }
 0x9a5   :  { %v889_v9 = vpop.f32.mrb[4].mxu0 }
 0x9a6   :  { %v890_v10 = vadd.f32 %v889_v9, %v818_v8  ;;  %v1388_v11 = vpop.f32.mrb[5].mxu0  ;;  %v1012_v9 = vsel %vm1011_vm9, %v1010_v7, %v990_v1 }
 0x9a8   :  { %1549 = vtanh.f32 %v890_v10 }
 0x9b2   :  { %v1550_v12 = vpop.eup %1549 }
 0x9b3   :  { %992 = vrot.lane.b32.xlu1 %v1550_v12, %s1592_s23  ;;  %1400 = vmatmul.mubr.msk.f32.vlgmr.msra.gmra.mrb[20].mxu1 %vm137_vm3, %v1550_v12 }
 0xa25   :  { %v993_v2 = vpop.permute.xlu1 %992 }
 0xa26   :  { %v1014_v11 = vsel %vm1013_vm11, %v1012_v9, %v993_v2 }
 0xa86   :  { %v963_v56 = vpop.f32.mrb[20].mxu1 }
 0xa87   :  { %v964_v57 = vadd.f32 %v1698_v15, %v963_v56  ;;  %v1401_v58 = vpop.f32.mrb[21].mxu1  ;;  %v1000_v15 = vsel %vm137_vm3, %v999_v5, %v972_v62 }
 0xa88   :  { %v1002_v8 = vsel %vm1001_vm8, %v1000_v15, %v975_v0 }
 0xa89   :  { %1551 = vtanh.f32 %v964_v57  ;;  %v1004_v10 = vsel %vm1003_vm10, %v1002_v8, %v978_v3 }
 0xa8a   :  { %v1006_v4 = vsel %vm1005_vm12, %v1004_v10, %v981_v6 }
 0xa8b   :  { %v1008_v14 = vsel %vm1007_vm14, %v1006_v4, %v984_v61 }
 0xa93   :  { %v1552_v59 = vpop.eup %1551 }
 0xa94   :  { %996 = vrot.lane.b32.xlu1 %v1552_v59, %s1594_s24 }
 0xb06   :  { %v997_v12 = vpop.permute.xlu1 %996 }
 0xb07   :  { %v1016_v13 = vsel %vm1015_vm13, %v1014_v11, %v997_v12 }
 0xb08   :  { %1174 = vmatprep.mubr.msk.f32.mxu0 %vm1052_vm15, %v1016_v13 }
 0xb09   :  { %1125 = vmatmul.mubr.f32.vlgmr.msra.gmra.mrb[6].mxu0 %v1008_v14 }
 0xbdc   :  { %v1126_v16 = vpop.f32.mrb[6].mxu0 }
 0xbdd   :  { %v1127_v17 = vadd.f32 %v1172_v34, %v1126_v16  ;;  %v1128_v18 = vpop.f32.mrb[7].mxu0 }
 0xbdf   :  { %v1131_v19 = vsel %vm1130_vm0, %v1127_v17, -inf }
 0xbe0   :  { %1132 = vmax.xlane.f32.xlu0 %v1131_v19 }
 0xc6d   :  { %v1133_v20 = vpop.xlane.xlu0 %1132 }
 0xc6e   :  { %v1134_v21 = vsub.f32 %v1127_v17, %v1133_v20 }
 0xc70   :  { %v1135_v22 = vmul.f32 1.442695, %v1134_v21 }
 0xc72   :  { %1553 = vpow2.f32 %v1135_v22 }
 0xc7c   :  { %v1554_v23 = vpop.eup %1553 }
 0xc7d   :  { %v1137_v24 = vsel %vm1130_vm0, %v1554_v23, 0.0 }
 0xc7e   :  { %1138 = vadd.xlane.f32.xlu1 %v1137_v24 }
 0xd0b   :  { %v1139_v25 = vpop.xlane.xlu1 %1138 }
 0xd0c   :  { %1555 = vrcp.f32 %v1139_v25 }
 0xd16   :  { %v1556_v26 = vpop.eup %1555 }
 0xd17   :  { %v1141_v27 = vmul.f32 %v1556_v26, %v1554_v23 }
 0xd19   :  { %1142 = vst.msk [vmem:[#allocation2] sm:$0x3] %vm1130_vm0, %v1141_v27 }
 0xd1a   :  { %1568 = shalt.err (!%p1565_p4)
}
 0xd1b   :  { %s1569_s29 = scalar_lea.hbm %s1917_s6, 32 }
 0xd1c   :  { %p1570_p5 = scmp.ne.s32.totalorder %s1917_s6, %s1569_s29  ;;  %p1573_p6 = scmp.lt.u32.totalorder %s1569_s29, %s1917_s6 }
 0xd1e   :  { %p1575_p7 = pnand %p1573_p6, %p1570_p5 }
 0xd20   :  { %1578 = shalt.err (!%p1575_p7)
}
 0xd21   :  { %1152 = dma.vmem_to_hbm [thread:$0]  %s1150_s1, 32, %s1917_s6, [#allocation3]  }
 0xd22   :  { %1579 = dma.done.wait [#allocation3], 32  }
 0xd23   :  { %1580 = vsyncadd [#allocation3], 4294967264 }
 0xd24   :  { %1156 = vsyncpa [#allocation3], 1 }

</bundles_post_ra>
